<compile_context>
chip_gen: v5e
topology: v5e:2x2
jax: 0.10.0
libtpu: 0.0.40
codegen_flags: <defaults>
</compile_context>

<pallas_src>
import jax
import jax.numpy as jnp
from jax.experimental import pallas as pl
from jax.experimental.pallas import tpu as pltpu


def _identity_kernel(x_ref, o_ref):
    # Pure identity: copy the current VMEM tile to the output tile.
    o_ref[...] = x_ref[...]


def _min_sublanes(dtype) -> int:
    """Minimum second-minor tile size for this dtype (8 f32 / 16 bf16 / 32 int8)."""
    itemsize = jnp.dtype(dtype).itemsize
    return 8 * max(1, 4 // itemsize)


def _as_lane_dense_2d(x: jax.Array) -> jax.Array:
    """Free (row-major) reshape of x to a lane-dense 2-D slab when possible."""
    n = x.size
    # Prefer a wide, 128-aligned lane axis → wide unmasked stores / wide DMAs.
    for w in (32768, 16384, 8192, 4096, 2048, 1024, 512, 256, 128):
        if n % w == 0:
            return x.reshape(n // w, w)
    # Ragged fallback: keep the natural trailing axis as lanes.
    if x.ndim >= 2:
        return x.reshape(-1, x.shape[-1])
    return x.reshape(1, n)


_TARGET_TILE_BYTES = 2 * 1024 * 1024  # ~2 MiB tiles; 4x live fits every default VMEM limit
_MAX_FULL_LANES = 16384               # above this, also tile the lane axis


def no_norm_pallas_copy(x: jax.Array) -> jax.Array:
    """Materialized identity copy of `x` via a tiled, lane-dense Pallas kernel."""
    if x.size == 0:
        return x

    orig_shape = x.shape
    x2 = x.reshape(1, 1) if x.ndim == 0 else _as_lane_dense_2d(x)
    rows, cols = x2.shape
    itemsize = jnp.dtype(x.dtype).itemsize
    sub = _min_sublanes(x.dtype)

    # Lane tile: full width when reasonable (widest possible stores), else a
    # large multiple of 128 with a cdiv grid (Pallas masks the ragged edge).
    tile_c = cols if cols <= _MAX_FULL_LANES else 8192

    # Row tile: fill ~_TARGET_TILE_BYTES, aligned to the dtype's sublane tile.
    budget_rows = max(1, _TARGET_TILE_BYTES // (tile_c * itemsize))
    if rows <= budget_rows:
        tile_r = rows                                 # full extent — always legal
    else:
        tile_r = max(sub, (budget_rows // sub) * sub)  # multiple of min sublane tile

    grid = (pl.cdiv(rows, tile_r), pl.cdiv(cols, tile_c))

    out = pl.pallas_call(
        _identity_kernel,
        out_shape=jax.ShapeDtypeStruct((rows, cols), x.dtype),
        grid=grid,
        in_specs=[pl.BlockSpec((tile_r, tile_c), lambda i, j: (i, j))],
        out_specs=pl.BlockSpec((tile_r, tile_c), lambda i, j: (i, j)),
        compiler_params=pltpu.CompilerParams(
            dimension_semantics=("parallel", "parallel")),
    )(x2)

    return out.reshape(orig_shape)


def no_norm_forward(x: jax.Array, mode: str = "direct") -> jax.Array:
    """NoNorm forward: exact identity for every mode (zero HBM traffic)."""
    del mode
    return x


class NoNorm:
    """Identity normalization (NoNorm). Mirrors the PyTorch module: no
    parameters, forward returns its input unchanged regardless of `mode`."""

    def __init__(self, normalized_shape, eps: float = 1e-5,
                 pre_norm: bool = True, post_norm: bool = False, **kwargs):
        self.normalized_shape = normalized_shape
        self.eps = eps
        self.pre_norm = pre_norm
        self.post_norm = post_norm
        # No parameters to initialize (NoNorm has none).

    def __call__(self, x: jax.Array, mode: str = "direct") -> jax.Array:
        return no_norm_forward(x, mode)


if __name__ == "__main__":
    key = jax.random.PRNGKey(0)
    # Small shape consistent with a normalization layer: (batch, seq, hidden).
    B, S, H = 2, 8, 32
    x = jax.random.normal(key, (B, S, H), dtype=jnp.float32)

    layer = NoNorm(normalized_shape=H)

    # 1) Module forward: true identity — returns x with zero HBM traffic.
    y = jax.block_until_ready(layer(x, mode="direct"))
    assert y.shape == x.shape and y.dtype == x.dtype, (y.shape, y.dtype)
    assert bool(jnp.array_equal(y, x)), "NoNorm forward must be an exact identity"

    # 2) Explicit Pallas identity-copy kernel (lane-dense tiled path).
    y2 = jax.block_until_ready(no_norm_pallas_copy(x))
    assert y2.shape == x.shape and y2.dtype == x.dtype, (y2.shape, y2.dtype)
    assert bool(jnp.array_equal(y2, x)), "Pallas copy must reproduce the input exactly"

    # 3) Also exercise a ragged (non-128-divisible), bf16 case through the kernel.
    x3 = jax.random.normal(jax.random.PRNGKey(0), (3, 8, 20), dtype=jnp.bfloat16)
    y3 = jax.block_until_ready(no_norm_pallas_copy(x3))
    assert y3.shape == x3.shape and y3.dtype == x3.dtype
    assert bool(jnp.array_equal(y3, x3)), "Pallas copy must be exact for bf16 too"

    print("KERNEL_OK")
</pallas_src>

<mosaic_0001>
module attributes {stable_mosaic.version = 11 : i64} {
  func.func @_identity_kernel(%arg0: i32, %arg1: i32, %arg2: memref<1x512xf32, #tpu.memory_space<vmem>>, %arg3: memref<1x512xf32, #tpu.memory_space<vmem>>) attributes {dimension_semantics = [#tpu.dimension_semantics<parallel>, #tpu.dimension_semantics<parallel>], iteration_bounds = array<i64: 1, 1>, scalar_prefetch = 0 : i64, scratch_operands = 0 : i64, tpu.core_type = #tpu.core_type<tc>, window_params = [{transform_indices = @transform_0, window_bounds = array<i64: 1, 512>}, {transform_indices = @transform_1, window_bounds = array<i64: 1, 512>}]} {
    %c0 = arith.constant 0 : index
    %c0_0 = arith.constant 0 : index
    %0 = vector.load %arg2[%c0, %c0_0] : memref<1x512xf32, #tpu.memory_space<vmem>>, vector<1x512xf32>
    %c0_1 = arith.constant 0 : index
    %c0_2 = arith.constant 0 : index
    %1 = vector.load %arg3[%c0_1, %c0_2] : memref<1x512xf32, #tpu.memory_space<vmem>>, vector<1x512xf32>
    tpu.vector_store %arg3[%c0_1, %c0_2], %0 {strides = array<i32>} : memref<1x512xf32, #tpu.memory_space<vmem>>, vector<1x512xf32>,
    return
  }
  func.func @transform_0(%arg0: i32, %arg1: i32) -> (i32, i32) {
    %c0_i32 = arith.constant 0 : i32
    return %arg0, %arg1 : i32, i32
  }
  func.func @transform_1(%arg0: i32, %arg1: i32) -> (i32, i32) {
    %c0_i32 = arith.constant 0 : i32
    return %arg0, %arg1 : i32, i32
  }
}

</mosaic_0001>

<bundles_post_ra>
// kernel: tpu_custom_call.1
= control target key start
LH: loop header
LB: loop body
LE: loop exit
PB: predicated region body
PF: predicated region fallthrough
CT: control target
= control target key end

     0   :  { %6 = vsyncpa [#allocation3], 0  ;;  %s118_s0 = inlined_call_operand.hbm [shape: f32[1,512], index: 0, kind: input, shape index: {}]   ;;  %s119_s1 = inlined_call_operand.hbm [shape: f32[1,512], index: 1, kind: output, shape index: {}]  }
   0x1   :  { %7 = vsyncpa [#allocation4], 0  ;;  %s13_s8 = sshll.u32 %s118_s0, 4  ;;  %s100_s9 = smov [#allocation2]   ;;  %s14_s8 = int_to_ptr.hbm [resolvable:$true] %s13_s8 }
   0x2   :  { %s15_s10 = sshll.u32 %s100_s9, 4  ;;  %s16_s10 = int_to_ptr.vmem [resolvable:$true] %s15_s10 }
   0x3   :  { %18 = dma.hbm_to_vmem [thread:$0]  %s14_s8, 64, %s16_s10, [#allocation3]  }
   0x4   :  { %96 = dma.done.wait [#allocation3], 64  }
   0x5   :  { %97 = vsyncadd [#allocation3], 4294967232  ;;  %v24_v0 = vlaneseq  ;;  %s101_s11 = smov [#allocation5]   ;;  %s36_s15 = sshll.u32 %s119_s1, 4  ;;  %v23_v1 = vld [vmem:[#allocation2] sm:$0xf]  ;;  %s37_s15 = int_to_ptr.hbm [resolvable:$true] %s36_s15 }
   0x6   :  { %s34_s12 = sshll.u32 %s101_s11, 4  ;;  %s35_s12 = int_to_ptr.vmem [resolvable:$true] %s34_s12 }
   0x7   :  { %vm26_vm0 = vcmp.lt.s32.totalorder %v24_v0, 512 }
   0x8   :  { %28 = vst.msk [vmem:[#allocation5] sm:$0xf] %vm26_vm0, %v23_v1 }
   0x9   :  { %39 = dma.vmem_to_hbm [thread:$0]  %s35_s12, 64, %s37_s15, [#allocation4]  }
   0xa   :  { %98 = dma.done.wait [#allocation4], 64  }
   0xb   :  { %99 = vsyncadd [#allocation4], 4294967232 }
   0xc   :  { %44 = vsyncpa [#allocation3], 1 }
   0xd   :  { %45 = vsyncpa [#allocation4], 1 }

</bundles_post_ra>
